<compile_context>
chip_gen: v6e
topology: v6e:2x2x1
jax: 0.10.0
libtpu: 0.0.40
codegen_flags: <defaults>
</compile_context>

<pallas_src>
import math

import jax
import jax.numpy as jnp
from jax.experimental import pallas as pl
from jax.experimental.pallas import tpu as pltpu


# ----------------------------- Pallas kernel --------------------------------
def _gate_scale_kernel(g_ref, x_ref, o_ref):
    # g_ref: (rows_tile, 1)                  per-(b, c) gate
    # x_ref, o_ref: (rows_tile, cols_tile)   lane-dense flattened spatial dims
    o_ref[...] = x_ref[...] * g_ref[...]


def _pick_tiles(n_rows, n_cols, itemsize, target_block_bytes=8 << 20):
    """Tile the flattened (B*C, H*W) gating problem.

    rows_tile is a multiple of 8 (sublanes); cols_tile is the full width
    (lane-dense, no ragged column masking) unless a single 8-row stripe would
    exceed the per-block budget, in which case it is a multiple of 128.
    Returns (rows_tile, cols_tile, grid, vmem_limit_bytes).
    """
    LANE, SUB = 128, 8
    cols_pad_full = -(-n_cols // LANE) * LANE

    if SUB * cols_pad_full * itemsize <= target_block_bytes:
        cols_tile, cols_pad = n_cols, cols_pad_full
    else:
        cols_tile = max(LANE,
                        (target_block_bytes // (SUB * itemsize)) // LANE * LANE)
        cols_pad = cols_tile
    n_col_blocks = pl.cdiv(n_cols, cols_tile)

    rows_padded = -(-n_rows // SUB) * SUB
    max_rows = max(SUB,
                   (target_block_bytes // (cols_pad * itemsize)) // SUB * SUB)
    rows_tile = min(max_rows, rows_padded)
    n_row_blocks = pl.cdiv(n_rows, rows_tile)

    # Megacore balance (v7x has 2 TCs sharing the "parallel" grid): prefer a
    # few grid steps as long as blocks stay >= ~1 MiB (still ~85% of HBM
    # roofline per measured tiled-add data).
    MIN_BLOCK_BYTES = 1 << 20
    while n_row_blocks * n_col_blocks < 4 and rows_tile > SUB:
        cand = -(-(rows_tile // 2) // SUB) * SUB
        if cand * cols_pad * itemsize < MIN_BLOCK_BYTES:
            break
        rows_tile = cand
        n_row_blocks = pl.cdiv(n_rows, rows_tile)

    # Padding-aware VMEM budget: double-buffered in + out data blocks, the
    # lane-padded (rows_tile, 1)->(rows_tile, 128) gate blocks, plus slack.
    block_bytes = rows_tile * cols_pad * itemsize
    gate_bytes = rows_tile * LANE * itemsize
    vmem_limit = 4 * block_bytes + 2 * gate_bytes + (2 << 20)
    # Explicit limit matters on v5e (16 MiB default scoped VMEM); the 8 MiB
    # block target keeps the total well under v7x's 64 MiB physical VMEM.
    vmem_limit = int(min(max(vmem_limit, 16 << 20), 48 << 20))

    return rows_tile, cols_tile, (n_row_blocks, n_col_blocks), vmem_limit


def _channel_view_sum(x):
    """y[b, c] = sum_{i % C == c} x.reshape(B, -1)[b, i]  (torch .view mixing).

    When C*H*W is a multiple of lcm(C, 128), re-chunk so the reduce's minor
    (lane) dim is a multiple of 128 -> lane-dense reads even for C < 128.  All
    reshapes are row-major bitcasts (no HBM traffic).
    """
    B, C, H, W = x.shape
    K = C * H * W
    chunk = (C * 128) // math.gcd(C, 128)            # lcm(C, 128)
    if K % chunk == 0:
        partial = jnp.sum(x.reshape(B, K // chunk, chunk), axis=1)   # (B, chunk)
        return jnp.sum(partial.reshape(B, chunk // C, C), axis=1)    # (B, C)
    return jnp.sum(x.reshape(B, H * W, C), axis=1)                   # fallback


@jax.jit
def waveletatt(x, w1, w2):
    """WA-Net Waveletatt forward.

    x : (B, C, H, W)
    w1: (C//2, C)    fc1 weight (PyTorch Linear layout, bias-free)
    w2: (C, C//2)    fc2 weight (PyTorch Linear layout, bias-free)
    """
    B, C, H, W = x.shape
    BC, HW = B * C, H * W

    # ---- squeeze: Upsample(2, nearest) + Haar DWT + subband/spatial sum -----
    y = 2.0 * _channel_view_sum(x)                                   # (B, C)

    # ---- excitation: Linear -> ReLU -> Linear -> Sigmoid (tiny, plain JAX) --
    g = jax.nn.sigmoid(jnp.maximum(y @ w1.T, 0.0) @ w2.T)            # (B, C)
    g2 = g.astype(x.dtype).reshape(BC, 1)                            # bitcast

    # ---- gating pass in Pallas: out = x * g (1 HBM read + 1 HBM write) ------
    x2 = x.reshape(BC, HW)                                           # bitcast
    rows_tile, cols_tile, grid, vmem_limit = _pick_tiles(
        BC, HW, x.dtype.itemsize)

    out2 = pl.pallas_call(
        _gate_scale_kernel,
        out_shape=jax.ShapeDtypeStruct((BC, HW), x.dtype),
        grid_spec=pltpu.PrefetchScalarGridSpec(
            num_scalar_prefetch=0,
            grid=grid,
            in_specs=[
                pl.BlockSpec((rows_tile, 1), lambda r, c: (r, 0)),
                pl.BlockSpec((rows_tile, cols_tile), lambda r, c: (r, c)),
            ],
            out_specs=pl.BlockSpec((rows_tile, cols_tile), lambda r, c: (r, c)),
        ),
        compiler_params=pltpu.CompilerParams(
            dimension_semantics=("parallel", "parallel"),
            vmem_limit_bytes=vmem_limit,
        ),
    )(g2, x2)
    return out2.reshape(B, C, H, W)


# ------------------------------- reference ----------------------------------
def reference_waveletatt(x, w1, w2):
    """Pure-JAX reference: explicit nearest-2x upsample + Haar DWT_2D + SE fc."""
    B, C, H, W = x.shape
    s = 1.0 / jnp.sqrt(2.0)
    xv = x.reshape(B, H, W, C)                        # torch x.view(B, H, W, C)
    xp = jnp.transpose(xv, (0, 3, 2, 1))              # (B, C, W, H)
    up = jnp.repeat(jnp.repeat(xp, 2, axis=2), 2, axis=3)    # nearest 2x
    L = s * (up[..., 0::2] + up[..., 1::2])
    Hh = s * (up[..., 1::2] - up[..., 0::2])
    LL = s * (L[:, :, 0::2, :] + L[:, :, 1::2, :])
    HL = s * (L[:, :, 1::2, :] - L[:, :, 0::2, :])
    LH = s * (Hh[:, :, 0::2, :] + Hh[:, :, 1::2, :])
    HH = s * (Hh[:, :, 1::2, :] - Hh[:, :, 0::2, :])
    y = jnp.sum(LL + LH + HL + HH, axis=(2, 3))       # (B, C)
    h = jnp.maximum(y @ w1.T, 0.0)
    g = jax.nn.sigmoid(h @ w2.T)                      # (B, C)
    return x * g[:, :, None, None]


if __name__ == "__main__":
    B, C, H, W = 2, 4, 16, 16
    C2 = C // 2
    key = jax.random.PRNGKey(0)
    kx, k1, k2 = jax.random.split(key, 3)
    x = jax.random.normal(kx, (B, C, H, W), dtype=jnp.float32)
    # Deterministic synthetic parameters (PyTorch Linear weight layout: (out, in)).
    w1 = 0.05 * jax.random.normal(k1, (C2, C), dtype=jnp.float32)   # fc1: C -> C//2
    w2 = 0.05 * jax.random.normal(k2, (C, C2), dtype=jnp.float32)   # fc2: C//2 -> C

    out = waveletatt(x, w1, w2)
    jax.block_until_ready(out)

    ref = reference_waveletatt(x, w1, w2)
    assert out.shape == x.shape
    assert jnp.allclose(out, ref, atol=1e-4, rtol=1e-4), float(
        jnp.max(jnp.abs(out - ref)))
    print("KERNEL_OK")
</pallas_src>

<mosaic_0001>
module attributes {stable_mosaic.version = 11 : i64} {
  func.func @_gate_scale_kernel(%arg0: i32, %arg1: i32, %arg2: memref<8x1xf32, #tpu.memory_space<vmem>>, %arg3: memref<8x256xf32, #tpu.memory_space<vmem>>, %arg4: memref<8x256xf32, #tpu.memory_space<vmem>>) attributes {dimension_semantics = [#tpu.dimension_semantics<parallel>, #tpu.dimension_semantics<parallel>], iteration_bounds = array<i64: 1, 1>, scalar_prefetch = 0 : i64, scratch_operands = 0 : i64, tpu.core_type = #tpu.core_type<tc>, window_params = [{transform_indices = @transform_0, window_bounds = array<i64: 8, 1>}, {transform_indices = @transform_1, window_bounds = array<i64: 8, 256>}, {transform_indices = @transform_2, window_bounds = array<i64: 8, 256>}]} {
    %c0 = arith.constant 0 : index
    %c0_0 = arith.constant 0 : index
    %0 = vector.load %arg3[%c0, %c0_0] : memref<8x256xf32, #tpu.memory_space<vmem>>, vector<8x256xf32>
    %c0_1 = arith.constant 0 : index
    %c0_2 = arith.constant 0 : index
    %1 = vector.load %arg2[%c0_1, %c0_2] : memref<8x1xf32, #tpu.memory_space<vmem>>, vector<8x1xf32>
    %2 = vector.broadcast %1 : vector<8x1xf32> to vector<8x256xf32>
    %3 = arith.mulf %0, %2 : vector<8x256xf32>
    %c0_3 = arith.constant 0 : index
    %c0_4 = arith.constant 0 : index
    %4 = vector.load %arg4[%c0_3, %c0_4] : memref<8x256xf32, #tpu.memory_space<vmem>>, vector<8x256xf32>
    tpu.vector_store %arg4[%c0_3, %c0_4], %3 {strides = array<i32>} : memref<8x256xf32, #tpu.memory_space<vmem>>, vector<8x256xf32>,
    return
  }
  func.func @transform_0(%arg0: i32, %arg1: i32) -> (i32, i32) {
    %c0_i32 = arith.constant 0 : i32
    %c0_i32_0 = arith.constant 0 : i32
    return %arg0, %c0_i32 : i32, i32
  }
  func.func @transform_1(%arg0: i32, %arg1: i32) -> (i32, i32) {
    %c0_i32 = arith.constant 0 : i32
    return %arg0, %arg1 : i32, i32
  }
  func.func @transform_2(%arg0: i32, %arg1: i32) -> (i32, i32) {
    %c0_i32 = arith.constant 0 : i32
    return %arg0, %arg1 : i32, i32
  }
}

</mosaic_0001>

<bundles_post_ra>
// kernel: waveletatt.1
= control target key start
LH: loop header
LB: loop body
LE: loop exit
PB: predicated region body
PF: predicated region fallthrough
CT: control target
= control target key end

     0   :  { %v29_v0 = vmov 0   ;;  %s60_s0 = inlined_call_operand.vmem [shape: f32[8,1], index: 0, kind: input, shape index: {}]   ;;  %s61_s1 = inlined_call_operand.vmem [shape: f32[8,256], index: 1, kind: input, shape index: {}]   ;;  %s62_s2 = inlined_call_operand.vmem [shape: f32[8,256], index: 2, kind: output, shape index: {}]  }
   0x1   :  { %28 = vset.pattern.permute.xlu0 %v29_v0  ;;  %v13_v1 = vld [vmem:[%s60_s0] sm:$0xff]  ;;  %v12_v3 = vld [vmem:[%s61_s1 + $0x8] sm:$0xff] }
   0x2   :  { %16 = vperm.xlu0 %28, %v13_v1   ;;  %v11_v2 = vld [vmem:[%s61_s1] sm:$0xff] }
  0x7d   :  { %v17_v4 = vpop.permute.xlu0 %16 }
  0x7e   :  { %v19_v5 = vmul.f32 %v17_v4, %v11_v2  ;;  %v20_v6 = vmul.f32 %v17_v4, %v12_v3 }
  0x80   :  { %21 = vst [vmem:[%s62_s2] sm:$0xff] %v19_v5  ;;  %22 = vst [vmem:[%s62_s2 + $0x8] sm:$0xff] %v20_v6 }

</bundles_post_ra>
